<compile_context>
chip_gen: v7x
topology: tpu7x:2x2x1
jax: 0.10.0
libtpu: 0.0.40
codegen_flags: <defaults>
</compile_context>

<pallas_src>
import functools

import jax
import jax.numpy as jnp
from jax.experimental import pallas as pl
from jax.experimental.pallas import tpu as pltpu


def _yolo_loss_kernel(pred_ref, targ_ref, out_ref, *, inv_S, l_coord, l_noobj):
    # pred_ref/targ_ref block: (26, R, 128) -- 26 channels x (R*128) grid cells.
    p = pred_ref[...].astype(jnp.float32)
    t = targ_ref[...].astype(jnp.float32)

    coo = t[4] > 0.0          # (R, 128) cell contains an object
    noo = t[4] == 0.0         # (R, 128) no object (zero-padded cells land here)
    zero = jnp.zeros_like(t[4])

    # ---- no-object confidence term: both box confidences of noo cells ----
    noo_term = (p[4] - t[4]) ** 2 + (p[9] - t[9]) ** 2

    # ---- class term over coo cells (sum along leading dim = pure VPU adds) ----
    cls_d = p[10:] - t[10:]                       # (16, R, 128)
    class_sum = jnp.sum(cls_d * cls_d, axis=0)    # (R, 128)

    # ---- per-box IoU between pred box k and target box k (k = 0, 1) ----
    def pair_iou(pb, tb):
        # pb, tb: (5, R, 128) boxes (cx, cy, w, h, conf) in YOLO cell coords.
        p_hw = 0.5 * pb[2]
        p_hh = 0.5 * pb[3]
        t_hw = 0.5 * tb[2]
        t_hh = 0.5 * tb[3]
        p_cx = pb[0] * inv_S
        p_cy = pb[1] * inv_S
        t_cx = tb[0] * inv_S
        t_cy = tb[1] * inv_S
        px1, px2 = p_cx - p_hw, p_cx + p_hw
        py1, py2 = p_cy - p_hh, p_cy + p_hh
        tx1, tx2 = t_cx - t_hw, t_cx + t_hw
        ty1, ty2 = t_cy - t_hh, t_cy + t_hh
        iw = jnp.maximum(jnp.minimum(px2, tx2) - jnp.maximum(px1, tx1), 0.0)
        ih = jnp.maximum(jnp.minimum(py2, ty2) - jnp.maximum(py1, ty1), 0.0)
        inter = iw * ih
        a1 = (px2 - px1) * (py2 - py1)
        a2 = (tx2 - tx1) * (ty2 - ty1)
        # exact divide kept for bit-level parity with the reference
        return inter / (a1 + a2 - inter)

    pb0, pb1 = p[0:5], p[5:10]
    tb0, tb1 = t[0:5], t[5:10]
    iou0 = pair_iou(pb0, tb0)
    iou1 = pair_iou(pb1, tb1)

    # responsible box = argmax IoU (ties -> box 0, first-max convention)
    resp1 = iou1 > iou0
    max_iou = jnp.maximum(iou0, iou1)
    conf_resp = jnp.where(resp1, pb1[4], pb0[4])
    conf_not = jnp.where(resp1, pb0[4], pb1[4])

    # localization term on the responsible box only
    def loc_term(pb, tb):
        dxy = (pb[0] - tb[0]) ** 2 + (pb[1] - tb[1]) ** 2
        dwh = ((jnp.sqrt(pb[2]) - jnp.sqrt(tb[2])) ** 2
               + (jnp.sqrt(pb[3]) - jnp.sqrt(tb[3])) ** 2)
        return dxy + dwh

    loc_val = jnp.where(resp1, loc_term(pb1, tb1), loc_term(pb0, tb0))

    # ---- fused per-cell total (all five losses), masked then reduced once ----
    coo_total = (l_coord * loc_val
                 + (conf_resp - max_iou) ** 2
                 + conf_not * conf_not
                 + class_sum)
    cell_total = (jnp.where(coo, coo_total, zero)
                  + jnp.where(noo, l_noobj * noo_term, zero))

    # single sublane reduce per tile -> lane-dense (1, 128) partial sums
    out_ref[...] = jnp.sum(cell_total, axis=0, keepdims=True).reshape(1, 1, 128)


def yolo_loss_pallas(pred_tensor, target_tensor, *, S, B, l_coord, l_noobj,
                     tile_rows=128):
    """pred_tensor/target_tensor: (N, S, S, 5*B + 16), B must be 2.

    tile_rows: cells per grid step = tile_rows * 128 (tile_rows rounded to a
    multiple of 8).  128 (~1.7 MiB f32 per input block) is a safe default on
    v5e/v6e/v7x; 256 is a good choice on v6e with its larger scoped VMEM.
    """
    assert B == 2, "reference module hard-codes 2 boxes per cell (26 channels)"
    N, s1, s2, D = pred_tensor.shape
    assert s1 == S and s2 == S and D == 5 * B + 16
    assert target_tensor.shape == pred_tensor.shape
    M = N * S * S

    # Tile geometry: M cells -> rows of 128 lanes, rows grouped into tiles.
    rows_needed = int(pl.cdiv(M, 128))
    tile_rows = int(max(8, min(int(tile_rows), int(pl.cdiv(rows_needed, 8)) * 8)))
    tile_rows -= tile_rows % 8
    num_tiles = int(pl.cdiv(rows_needed, tile_rows))
    rows_pad = num_tiles * tile_rows
    m_pad = rows_pad * 128

    # Layout glue: (N, S, S, D) -> channel-major (D, rows_pad, 128).
    # Padded cells have target conf == 0 -> they fall in the noo mask and,
    # with zero-padded predictions, contribute exactly 0 to the loss.
    # TODO(synk): the (M,26)->(26,M) channel-major transpose is still a
    # separate XLA op (one extra HBM round trip); a channel-major producer or a
    # fused per-tile in-kernel transpose would remove it.
    def to_slab(x):
        x2 = jnp.transpose(x.reshape(M, D))            # (D, M), original dtype
        if m_pad != M:
            x2 = jnp.pad(x2, ((0, 0), (0, m_pad - M)))
        return x2.reshape(D, rows_pad, 128)

    p_slab = to_slab(pred_tensor)
    t_slab = to_slab(target_tensor)

    kernel = functools.partial(
        _yolo_loss_kernel,
        inv_S=1.0 / float(S), l_coord=float(l_coord), l_noobj=float(l_noobj))

    partial_sums = pl.pallas_call(
        kernel,
        grid=(num_tiles,),
        in_specs=[pl.BlockSpec((D, tile_rows, 128), lambda i: (0, i, 0)),
                  pl.BlockSpec((D, tile_rows, 128), lambda i: (0, i, 0))],
        out_specs=pl.BlockSpec((1, 1, 128), lambda i: (i, 0, 0)),
        out_shape=jax.ShapeDtypeStruct((num_tiles, 1, 128), jnp.float32),
        compiler_params=pltpu.CompilerParams(
            dimension_semantics=("parallel",),
            vmem_limit_bytes=32 * 1024 * 1024),
    )(p_slab, t_slab)

    return jnp.sum(partial_sums) / N


def _yolo_loss_reference(pred, targ, *, S, l_coord, l_noobj):
    """Pure-JAX dense re-statement of the PyTorch loss (for sanity checking)."""
    N = pred.shape[0]
    D = pred.shape[-1]
    p = pred.reshape(-1, D).astype(jnp.float32)
    t = targ.reshape(-1, D).astype(jnp.float32)
    coo = t[:, 4] > 0
    noo = t[:, 4] == 0

    nooobj = jnp.sum(jnp.where(
        noo, (p[:, 4] - t[:, 4]) ** 2 + (p[:, 9] - t[:, 9]) ** 2, 0.0))
    class_l = jnp.sum(jnp.where(
        coo, jnp.sum((p[:, 10:] - t[:, 10:]) ** 2, axis=-1), 0.0))

    def pair_iou(pb, tb):
        px1 = pb[:, 0] / S - 0.5 * pb[:, 2]; py1 = pb[:, 1] / S - 0.5 * pb[:, 3]
        px2 = pb[:, 0] / S + 0.5 * pb[:, 2]; py2 = pb[:, 1] / S + 0.5 * pb[:, 3]
        tx1 = tb[:, 0] / S - 0.5 * tb[:, 2]; ty1 = tb[:, 1] / S - 0.5 * tb[:, 3]
        tx2 = tb[:, 0] / S + 0.5 * tb[:, 2]; ty2 = tb[:, 1] / S + 0.5 * tb[:, 3]
        iw = jnp.maximum(jnp.minimum(px2, tx2) - jnp.maximum(px1, tx1), 0.0)
        ih = jnp.maximum(jnp.minimum(py2, ty2) - jnp.maximum(py1, ty1), 0.0)
        inter = iw * ih
        a1 = (px2 - px1) * (py2 - py1)
        a2 = (tx2 - tx1) * (ty2 - ty1)
        return inter / (a1 + a2 - inter)

    pb0, pb1, tb0, tb1 = p[:, 0:5], p[:, 5:10], t[:, 0:5], t[:, 5:10]
    iou0, iou1 = pair_iou(pb0, tb0), pair_iou(pb1, tb1)
    resp1 = iou1 > iou0
    max_iou = jnp.maximum(iou0, iou1)
    conf_resp = jnp.where(resp1, pb1[:, 4], pb0[:, 4])
    conf_not = jnp.where(resp1, pb0[:, 4], pb1[:, 4])
    contain = jnp.sum(jnp.where(coo, (conf_resp - max_iou) ** 2, 0.0))
    not_contain = jnp.sum(jnp.where(coo, conf_not ** 2, 0.0))

    def loc(pb, tb):
        return ((pb[:, 0] - tb[:, 0]) ** 2 + (pb[:, 1] - tb[:, 1]) ** 2
                + (jnp.sqrt(pb[:, 2]) - jnp.sqrt(tb[:, 2])) ** 2
                + (jnp.sqrt(pb[:, 3]) - jnp.sqrt(tb[:, 3])) ** 2)

    loc_l = jnp.sum(jnp.where(coo, jnp.where(resp1, loc(pb1, tb1), loc(pb0, tb0)), 0.0))
    return (l_coord * loc_l + contain + not_contain
            + l_noobj * nooobj + class_l) / N


if __name__ == "__main__":
    # Module hyper-parameters (small, consistent with the 26-channel layout)
    S, B, l_coord, l_noobj = 4, 2, 5.0, 0.5
    N, D = 2, 5 * B + 16                      # D = 26

    key = jax.random.PRNGKey(0)
    k_pred, k_conf, k_box, k_cls = jax.random.split(key, 4)

    # predictions: positive so sqrt(w), sqrt(h) is well defined (as in YOLO)
    pred = jax.random.uniform(k_pred, (N, S, S, D), jnp.float32,
                              minval=0.05, maxval=0.95)

    # targets: ~half the cells contain an object; both box slots hold the same
    # ground-truth box with confidence 1; cells w/o object are all zeros.
    has_obj = (jax.random.uniform(k_conf, (N, S, S)) > 0.5).astype(jnp.float32)
    gt_box = jax.random.uniform(k_box, (N, S, S, 4), jnp.float32,
                                minval=0.1, maxval=0.9)
    gt_cls = jax.random.uniform(k_cls, (N, S, S, 16), jnp.float32)
    ones = jnp.ones((N, S, S, 1), jnp.float32)
    target = jnp.concatenate([gt_box, ones, gt_box, ones, gt_cls], axis=-1)
    target = target * has_obj[..., None]

    loss = jax.block_until_ready(
        yolo_loss_pallas(pred, target, S=S, B=B,
                         l_coord=l_coord, l_noobj=l_noobj))

    ref = jax.block_until_ready(
        _yolo_loss_reference(pred, target, S=S,
                             l_coord=l_coord, l_noobj=l_noobj))

    assert jnp.isfinite(loss), "loss is not finite"
    assert jnp.allclose(loss, ref, rtol=1e-5, atol=1e-5), (loss, ref)
    print("KERNEL_OK")
</pallas_src>

<mosaic_0001>
module attributes {stable_mosaic.version = 11 : i64} {
  func.func @_yolo_loss_kernel(%arg0: i32, %arg1: memref<26x8x128xf32, #tpu.memory_space<vmem>>, %arg2: memref<26x8x128xf32, #tpu.memory_space<vmem>>, %arg3: memref<1x1x128xf32, #tpu.memory_space<vmem>>) attributes {dimension_semantics = [#tpu.dimension_semantics<parallel>], iteration_bounds = array<i64: 1>, scalar_prefetch = 0 : i64, scratch_operands = 0 : i64, tpu.core_type = #tpu.core_type<tc>, window_params = [{transform_indices = @transform_0, window_bounds = array<i64: 26, 8, 128>}, {transform_indices = @transform_1, window_bounds = array<i64: 26, 8, 128>}, {transform_indices = @transform_2, window_bounds = array<i64: 1, 1, 128>}]} {
    %c0 = arith.constant 0 : index
    %c0_0 = arith.constant 0 : index
    %c0_1 = arith.constant 0 : index
    %0 = vector.load %arg1[%c0, %c0_0, %c0_1] : memref<26x8x128xf32, #tpu.memory_space<vmem>>, vector<26x8x128xf32>
    %c0_2 = arith.constant 0 : index
    %c0_3 = arith.constant 0 : index
    %c0_4 = arith.constant 0 : index
    %1 = vector.load %arg2[%c0_2, %c0_3, %c0_4] : memref<26x8x128xf32, #tpu.memory_space<vmem>>, vector<26x8x128xf32>
    %2 = vector.extract_strided_slice %1 {offsets = [4, 0, 0], sizes = [1, 8, 128], strides = [1, 1, 1]} : vector<26x8x128xf32> to vector<1x8x128xf32>
    %3 = vector.shape_cast %2 : vector<1x8x128xf32> to vector<8x128xf32>
    %cst = arith.constant 0.000000e+00 : f32
    %4 = vector.broadcast %cst : f32 to vector<8x128xf32>
    %5 = arith.cmpf ogt, %3, %4 : vector<8x128xf32>
    %6 = vector.extract_strided_slice %1 {offsets = [4, 0, 0], sizes = [1, 8, 128], strides = [1, 1, 1]} : vector<26x8x128xf32> to vector<1x8x128xf32>
    %7 = vector.shape_cast %6 : vector<1x8x128xf32> to vector<8x128xf32>
    %cst_5 = arith.constant 0.000000e+00 : f32
    %8 = vector.broadcast %cst_5 : f32 to vector<8x128xf32>
    %9 = arith.cmpf oeq, %7, %8 : vector<8x128xf32>
    %cst_6 = arith.constant 0.000000e+00 : f32
    %10 = vector.broadcast %cst_6 : f32 to vector<8x128xf32>
    %11 = vector.extract_strided_slice %0 {offsets = [4, 0, 0], sizes = [1, 8, 128], strides = [1, 1, 1]} : vector<26x8x128xf32> to vector<1x8x128xf32>
    %12 = vector.shape_cast %11 : vector<1x8x128xf32> to vector<8x128xf32>
    %13 = vector.extract_strided_slice %1 {offsets = [4, 0, 0], sizes = [1, 8, 128], strides = [1, 1, 1]} : vector<26x8x128xf32> to vector<1x8x128xf32>
    %14 = vector.shape_cast %13 : vector<1x8x128xf32> to vector<8x128xf32>
    %15 = arith.subf %12, %14 : vector<8x128xf32>
    %16 = arith.mulf %15, %15 : vector<8x128xf32>
    %17 = vector.extract_strided_slice %0 {offsets = [9, 0, 0], sizes = [1, 8, 128], strides = [1, 1, 1]} : vector<26x8x128xf32> to vector<1x8x128xf32>
    %18 = vector.shape_cast %17 : vector<1x8x128xf32> to vector<8x128xf32>
    %19 = vector.extract_strided_slice %1 {offsets = [9, 0, 0], sizes = [1, 8, 128], strides = [1, 1, 1]} : vector<26x8x128xf32> to vector<1x8x128xf32>
    %20 = vector.shape_cast %19 : vector<1x8x128xf32> to vector<8x128xf32>
    %21 = arith.subf %18, %20 : vector<8x128xf32>
    %22 = arith.mulf %21, %21 : vector<8x128xf32>
    %23 = arith.addf %16, %22 : vector<8x128xf32>
    %24 = vector.extract_strided_slice %0 {offsets = [10, 0, 0], sizes = [16, 8, 128], strides = [1, 1, 1]} : vector<26x8x128xf32> to vector<16x8x128xf32>
    %25 = vector.extract_strided_slice %1 {offsets = [10, 0, 0], sizes = [16, 8, 128], strides = [1, 1, 1]} : vector<26x8x128xf32> to vector<16x8x128xf32>
    %26 = arith.subf %24, %25 : vector<16x8x128xf32>
    %27 = arith.mulf %26, %26 : vector<16x8x128xf32>
    %cst_7 = arith.constant dense<0.000000e+00> : vector<8x128xf32>
    %28 = vector.multi_reduction <add>, %27, %cst_7 [0] : vector<16x8x128xf32> to vector<8x128xf32>
    %29 = vector.extract_strided_slice %0 {offsets = [0, 0, 0], sizes = [5, 8, 128], strides = [1, 1, 1]} : vector<26x8x128xf32> to vector<5x8x128xf32>
    %30 = vector.extract_strided_slice %0 {offsets = [5, 0, 0], sizes = [5, 8, 128], strides = [1, 1, 1]} : vector<26x8x128xf32> to vector<5x8x128xf32>
    %31 = vector.extract_strided_slice %1 {offsets = [0, 0, 0], sizes = [5, 8, 128], strides = [1, 1, 1]} : vector<26x8x128xf32> to vector<5x8x128xf32>
    %32 = vector.extract_strided_slice %1 {offsets = [5, 0, 0], sizes = [5, 8, 128], strides = [1, 1, 1]} : vector<26x8x128xf32> to vector<5x8x128xf32>
    %33 = vector.extract_strided_slice %29 {offsets = [2, 0, 0], sizes = [1, 8, 128], strides = [1, 1, 1]} : vector<5x8x128xf32> to vector<1x8x128xf32>
    %34 = vector.shape_cast %33 : vector<1x8x128xf32> to vector<8x128xf32>
    %cst_8 = arith.constant 5.000000e-01 : f32
    %35 = vector.broadcast %cst_8 : f32 to vector<8x128xf32>
    %36 = arith.mulf %35, %34 : vector<8x128xf32>
    %37 = vector.extract_strided_slice %29 {offsets = [3, 0, 0], sizes = [1, 8, 128], strides = [1, 1, 1]} : vector<5x8x128xf32> to vector<1x8x128xf32>
    %38 = vector.shape_cast %37 : vector<1x8x128xf32> to vector<8x128xf32>
    %cst_9 = arith.constant 5.000000e-01 : f32
    %39 = vector.broadcast %cst_9 : f32 to vector<8x128xf32>
    %40 = arith.mulf %39, %38 : vector<8x128xf32>
    %41 = vector.extract_strided_slice %31 {offsets = [2, 0, 0], sizes = [1, 8, 128], strides = [1, 1, 1]} : vector<5x8x128xf32> to vector<1x8x128xf32>
    %42 = vector.shape_cast %41 : vector<1x8x128xf32> to vector<8x128xf32>
    %cst_10 = arith.constant 5.000000e-01 : f32
    %43 = vector.broadcast %cst_10 : f32 to vector<8x128xf32>
    %44 = arith.mulf %43, %42 : vector<8x128xf32>
    %45 = vector.extract_strided_slice %31 {offsets = [3, 0, 0], sizes = [1, 8, 128], strides = [1, 1, 1]} : vector<5x8x128xf32> to vector<1x8x128xf32>
    %46 = vector.shape_cast %45 : vector<1x8x128xf32> to vector<8x128xf32>
    %cst_11 = arith.constant 5.000000e-01 : f32
    %47 = vector.broadcast %cst_11 : f32 to vector<8x128xf32>
    %48 = arith.mulf %47, %46 : vector<8x128xf32>
    %49 = vector.extract_strided_slice %29 {offsets = [0, 0, 0], sizes = [1, 8, 128], strides = [1, 1, 1]} : vector<5x8x128xf32> to vector<1x8x128xf32>
    %50 = vector.shape_cast %49 : vector<1x8x128xf32> to vector<8x128xf32>
    %cst_12 = arith.constant 2.500000e-01 : f32
    %51 = vector.broadcast %cst_12 : f32 to vector<8x128xf32>
    %52 = arith.mulf %50, %51 : vector<8x128xf32>
    %53 = vector.extract_strided_slice %29 {offsets = [1, 0, 0], sizes = [1, 8, 128], strides = [1, 1, 1]} : vector<5x8x128xf32> to vector<1x8x128xf32>
    %54 = vector.shape_cast %53 : vector<1x8x128xf32> to vector<8x128xf32>
    %cst_13 = arith.constant 2.500000e-01 : f32
    %55 = vector.broadcast %cst_13 : f32 to vector<8x128xf32>
    %56 = arith.mulf %54, %55 : vector<8x128xf32>
    %57 = vector.extract_strided_slice %31 {offsets = [0, 0, 0], sizes = [1, 8, 128], strides = [1, 1, 1]} : vector<5x8x128xf32> to vector<1x8x128xf32>
    %58 = vector.shape_cast %57 : vector<1x8x128xf32> to vector<8x128xf32>
    %cst_14 = arith.constant 2.500000e-01 : f32
    %59 = vector.broadcast %cst_14 : f32 to vector<8x128xf32>
    %60 = arith.mulf %58, %59 : vector<8x128xf32>
    %61 = vector.extract_strided_slice %31 {offsets = [1, 0, 0], sizes = [1, 8, 128], strides = [1, 1, 1]} : vector<5x8x128xf32> to vector<1x8x128xf32>
    %62 = vector.shape_cast %61 : vector<1x8x128xf32> to vector<8x128xf32>
    %cst_15 = arith.constant 2.500000e-01 : f32
    %63 = vector.broadcast %cst_15 : f32 to vector<8x128xf32>
    %64 = arith.mulf %62, %63 : vector<8x128xf32>
    %65 = arith.subf %52, %36 : vector<8x128xf32>
    %66 = arith.addf %52, %36 : vector<8x128xf32>
    %67 = arith.subf %56, %40 : vector<8x128xf32>
    %68 = arith.addf %56, %40 : vector<8x128xf32>
    %69 = arith.subf %60, %44 : vector<8x128xf32>
    %70 = arith.addf %60, %44 : vector<8x128xf32>
    %71 = arith.subf %64, %48 : vector<8x128xf32>
    %72 = arith.addf %64, %48 : vector<8x128xf32>
    %73 = arith.minimumf %66, %70 : vector<8x128xf32>
    %74 = arith.maximumf %65, %69 : vector<8x128xf32>
    %75 = arith.subf %73, %74 : vector<8x128xf32>
    %cst_16 = arith.constant 0.000000e+00 : f32
    %76 = vector.broadcast %cst_16 : f32 to vector<8x128xf32>
    %77 = arith.maximumf %75, %76 : vector<8x128xf32>
    %78 = arith.minimumf %68, %72 : vector<8x128xf32>
    %79 = arith.maximumf %67, %71 : vector<8x128xf32>
    %80 = arith.subf %78, %79 : vector<8x128xf32>
    %cst_17 = arith.constant 0.000000e+00 : f32
    %81 = vector.broadcast %cst_17 : f32 to vector<8x128xf32>
    %82 = arith.maximumf %80, %81 : vector<8x128xf32>
    %83 = arith.mulf %77, %82 : vector<8x128xf32>
    %84 = arith.subf %66, %65 : vector<8x128xf32>
    %85 = arith.subf %68, %67 : vector<8x128xf32>
    %86 = arith.mulf %84, %85 : vector<8x128xf32>
    %87 = arith.subf %70, %69 : vector<8x128xf32>
    %88 = arith.subf %72, %71 : vector<8x128xf32>
    %89 = arith.mulf %87, %88 : vector<8x128xf32>
    %90 = arith.addf %86, %89 : vector<8x128xf32>
    %91 = arith.subf %90, %83 : vector<8x128xf32>
    %92 = arith.divf %83, %91 : vector<8x128xf32>
    %93 = vector.extract_strided_slice %30 {offsets = [2, 0, 0], sizes = [1, 8, 128], strides = [1, 1, 1]} : vector<5x8x128xf32> to vector<1x8x128xf32>
    %94 = vector.shape_cast %93 : vector<1x8x128xf32> to vector<8x128xf32>
    %cst_18 = arith.constant 5.000000e-01 : f32
    %95 = vector.broadcast %cst_18 : f32 to vector<8x128xf32>
    %96 = arith.mulf %95, %94 : vector<8x128xf32>
    %97 = vector.extract_strided_slice %30 {offsets = [3, 0, 0], sizes = [1, 8, 128], strides = [1, 1, 1]} : vector<5x8x128xf32> to vector<1x8x128xf32>
    %98 = vector.shape_cast %97 : vector<1x8x128xf32> to vector<8x128xf32>
    %cst_19 = arith.constant 5.000000e-01 : f32
    %99 = vector.broadcast %cst_19 : f32 to vector<8x128xf32>
    %100 = arith.mulf %99, %98 : vector<8x128xf32>
    %101 = vector.extract_strided_slice %32 {offsets = [2, 0, 0], sizes = [1, 8, 128], strides = [1, 1, 1]} : vector<5x8x128xf32> to vector<1x8x128xf32>
    %102 = vector.shape_cast %101 : vector<1x8x128xf32> to vector<8x128xf32>
    %cst_20 = arith.constant 5.000000e-01 : f32
    %103 = vector.broadcast %cst_20 : f32 to vector<8x128xf32>
    %104 = arith.mulf %103, %102 : vector<8x128xf32>
    %105 = vector.extract_strided_slice %32 {offsets = [3, 0, 0], sizes = [1, 8, 128], strides = [1, 1, 1]} : vector<5x8x128xf32> to vector<1x8x128xf32>
    %106 = vector.shape_cast %105 : vector<1x8x128xf32> to vector<8x128xf32>
    %cst_21 = arith.constant 5.000000e-01 : f32
    %107 = vector.broadcast %cst_21 : f32 to vector<8x128xf32>
    %108 = arith.mulf %107, %106 : vector<8x128xf32>
    %109 = vector.extract_strided_slice %30 {offsets = [0, 0, 0], sizes = [1, 8, 128], strides = [1, 1, 1]} : vector<5x8x128xf32> to vector<1x8x128xf32>
    %110 = vector.shape_cast %109 : vector<1x8x128xf32> to vector<8x128xf32>
    %cst_22 = arith.constant 2.500000e-01 : f32
    %111 = vector.broadcast %cst_22 : f32 to vector<8x128xf32>
    %112 = arith.mulf %110, %111 : vector<8x128xf32>
    %113 = vector.extract_strided_slice %30 {offsets = [1, 0, 0], sizes = [1, 8, 128], strides = [1, 1, 1]} : vector<5x8x128xf32> to vector<1x8x128xf32>
    %114 = vector.shape_cast %113 : vector<1x8x128xf32> to vector<8x128xf32>
    %cst_23 = arith.constant 2.500000e-01 : f32
    %115 = vector.broadcast %cst_23 : f32 to vector<8x128xf32>
    %116 = arith.mulf %114, %115 : vector<8x128xf32>
    %117 = vector.extract_strided_slice %32 {offsets = [0, 0, 0], sizes = [1, 8, 128], strides = [1, 1, 1]} : vector<5x8x128xf32> to vector<1x8x128xf32>
    %118 = vector.shape_cast %117 : vector<1x8x128xf32> to vector<8x128xf32>
    %cst_24 = arith.constant 2.500000e-01 : f32
    %119 = vector.broadcast %cst_24 : f32 to vector<8x128xf32>
    %120 = arith.mulf %118, %119 : vector<8x128xf32>
    %121 = vector.extract_strided_slice %32 {offsets = [1, 0, 0], sizes = [1, 8, 128], strides = [1, 1, 1]} : vector<5x8x128xf32> to vector<1x8x128xf32>
    %122 = vector.shape_cast %121 : vector<1x8x128xf32> to vector<8x128xf32>
    %cst_25 = arith.constant 2.500000e-01 : f32
    %123 = vector.broadcast %cst_25 : f32 to vector<8x128xf32>
    %124 = arith.mulf %122, %123 : vector<8x128xf32>
    %125 = arith.subf %112, %96 : vector<8x128xf32>
    %126 = arith.addf %112, %96 : vector<8x128xf32>
    %127 = arith.subf %116, %100 : vector<8x128xf32>
    %128 = arith.addf %116, %100 : vector<8x128xf32>
    %129 = arith.subf %120, %104 : vector<8x128xf32>
    %130 = arith.addf %120, %104 : vector<8x128xf32>
    %131 = arith.subf %124, %108 : vector<8x128xf32>
    %132 = arith.addf %124, %108 : vector<8x128xf32>
    %133 = arith.minimumf %126, %130 : vector<8x128xf32>
    %134 = arith.maximumf %125, %129 : vector<8x128xf32>
    %135 = arith.subf %133, %134 : vector<8x128xf32>
    %cst_26 = arith.constant 0.000000e+00 : f32
    %136 = vector.broadcast %cst_26 : f32 to vector<8x128xf32>
    %137 = arith.maximumf %135, %136 : vector<8x128xf32>
    %138 = arith.minimumf %128, %132 : vector<8x128xf32>
    %139 = arith.maximumf %127, %131 : vector<8x128xf32>
    %140 = arith.subf %138, %139 : vector<8x128xf32>
    %cst_27 = arith.constant 0.000000e+00 : f32
    %141 = vector.broadcast %cst_27 : f32 to vector<8x128xf32>
    %142 = arith.maximumf %140, %141 : vector<8x128xf32>
    %143 = arith.mulf %137, %142 : vector<8x128xf32>
    %144 = arith.subf %126, %125 : vector<8x128xf32>
    %145 = arith.subf %128, %127 : vector<8x128xf32>
    %146 = arith.mulf %144, %145 : vector<8x128xf32>
    %147 = arith.subf %130, %129 : vector<8x128xf32>
    %148 = arith.subf %132, %131 : vector<8x128xf32>
    %149 = arith.mulf %147, %148 : vector<8x128xf32>
    %150 = arith.addf %146, %149 : vector<8x128xf32>
    %151 = arith.subf %150, %143 : vector<8x128xf32>
    %152 = arith.divf %143, %151 : vector<8x128xf32>
    %153 = arith.cmpf ogt, %152, %92 : vector<8x128xf32>
    %154 = arith.maximumf %92, %152 : vector<8x128xf32>
    %155 = vector.extract_strided_slice %30 {offsets = [4, 0, 0], sizes = [1, 8, 128], strides = [1, 1, 1]} : vector<5x8x128xf32> to vector<1x8x128xf32>
    %156 = vector.shape_cast %155 : vector<1x8x128xf32> to vector<8x128xf32>
    %157 = vector.extract_strided_slice %29 {offsets = [4, 0, 0], sizes = [1, 8, 128], strides = [1, 1, 1]} : vector<5x8x128xf32> to vector<1x8x128xf32>
    %158 = vector.shape_cast %157 : vector<1x8x128xf32> to vector<8x128xf32>
    %159 = arith.select %153, %156, %158 : vector<8x128xi1>, vector<8x128xf32>
    %160 = vector.extract_strided_slice %29 {offsets = [4, 0, 0], sizes = [1, 8, 128], strides = [1, 1, 1]} : vector<5x8x128xf32> to vector<1x8x128xf32>
    %161 = vector.shape_cast %160 : vector<1x8x128xf32> to vector<8x128xf32>
    %162 = vector.extract_strided_slice %30 {offsets = [4, 0, 0], sizes = [1, 8, 128], strides = [1, 1, 1]} : vector<5x8x128xf32> to vector<1x8x128xf32>
    %163 = vector.shape_cast %162 : vector<1x8x128xf32> to vector<8x128xf32>
    %164 = arith.select %153, %161, %163 : vector<8x128xi1>, vector<8x128xf32>
    %165 = vector.extract_strided_slice %30 {offsets = [0, 0, 0], sizes = [1, 8, 128], strides = [1, 1, 1]} : vector<5x8x128xf32> to vector<1x8x128xf32>
    %166 = vector.shape_cast %165 : vector<1x8x128xf32> to vector<8x128xf32>
    %167 = vector.extract_strided_slice %32 {offsets = [0, 0, 0], sizes = [1, 8, 128], strides = [1, 1, 1]} : vector<5x8x128xf32> to vector<1x8x128xf32>
    %168 = vector.shape_cast %167 : vector<1x8x128xf32> to vector<8x128xf32>
    %169 = arith.subf %166, %168 : vector<8x128xf32>
    %170 = arith.mulf %169, %169 : vector<8x128xf32>
    %171 = vector.extract_strided_slice %30 {offsets = [1, 0, 0], sizes = [1, 8, 128], strides = [1, 1, 1]} : vector<5x8x128xf32> to vector<1x8x128xf32>
    %172 = vector.shape_cast %171 : vector<1x8x128xf32> to vector<8x128xf32>
    %173 = vector.extract_strided_slice %32 {offsets = [1, 0, 0], sizes = [1, 8, 128], strides = [1, 1, 1]} : vector<5x8x128xf32> to vector<1x8x128xf32>
    %174 = vector.shape_cast %173 : vector<1x8x128xf32> to vector<8x128xf32>
    %175 = arith.subf %172, %174 : vector<8x128xf32>
    %176 = arith.mulf %175, %175 : vector<8x128xf32>
    %177 = arith.addf %170, %176 : vector<8x128xf32>
    %178 = vector.extract_strided_slice %30 {offsets = [2, 0, 0], sizes = [1, 8, 128], strides = [1, 1, 1]} : vector<5x8x128xf32> to vector<1x8x128xf32>
    %179 = vector.shape_cast %178 : vector<1x8x128xf32> to vector<8x128xf32>
    %180 = math.sqrt %179 : vector<8x128xf32>
    %181 = vector.extract_strided_slice %32 {offsets = [2, 0, 0], sizes = [1, 8, 128], strides = [1, 1, 1]} : vector<5x8x128xf32> to vector<1x8x128xf32>
    %182 = vector.shape_cast %181 : vector<1x8x128xf32> to vector<8x128xf32>
    %183 = math.sqrt %182 : vector<8x128xf32>
    %184 = arith.subf %180, %183 : vector<8x128xf32>
    %185 = arith.mulf %184, %184 : vector<8x128xf32>
    %186 = vector.extract_strided_slice %30 {offsets = [3, 0, 0], sizes = [1, 8, 128], strides = [1, 1, 1]} : vector<5x8x128xf32> to vector<1x8x128xf32>
    %187 = vector.shape_cast %186 : vector<1x8x128xf32> to vector<8x128xf32>
    %188 = math.sqrt %187 : vector<8x128xf32>
    %189 = vector.extract_strided_slice %32 {offsets = [3, 0, 0], sizes = [1, 8, 128], strides = [1, 1, 1]} : vector<5x8x128xf32> to vector<1x8x128xf32>
    %190 = vector.shape_cast %189 : vector<1x8x128xf32> to vector<8x128xf32>
    %191 = math.sqrt %190 : vector<8x128xf32>
    %192 = arith.subf %188, %191 : vector<8x128xf32>
    %193 = arith.mulf %192, %192 : vector<8x128xf32>
    %194 = arith.addf %185, %193 : vector<8x128xf32>
    %195 = arith.addf %177, %194 : vector<8x128xf32>
    %196 = vector.extract_strided_slice %29 {offsets = [0, 0, 0], sizes = [1, 8, 128], strides = [1, 1, 1]} : vector<5x8x128xf32> to vector<1x8x128xf32>
    %197 = vector.shape_cast %196 : vector<1x8x128xf32> to vector<8x128xf32>
    %198 = vector.extract_strided_slice %31 {offsets = [0, 0, 0], sizes = [1, 8, 128], strides = [1, 1, 1]} : vector<5x8x128xf32> to vector<1x8x128xf32>
    %199 = vector.shape_cast %198 : vector<1x8x128xf32> to vector<8x128xf32>
    %200 = arith.subf %197, %199 : vector<8x128xf32>
    %201 = arith.mulf %200, %200 : vector<8x128xf32>
    %202 = vector.extract_strided_slice %29 {offsets = [1, 0, 0], sizes = [1, 8, 128], strides = [1, 1, 1]} : vector<5x8x128xf32> to vector<1x8x128xf32>
    %203 = vector.shape_cast %202 : vector<1x8x128xf32> to vector<8x128xf32>
    %204 = vector.extract_strided_slice %31 {offsets = [1, 0, 0], sizes = [1, 8, 128], strides = [1, 1, 1]} : vector<5x8x128xf32> to vector<1x8x128xf32>
    %205 = vector.shape_cast %204 : vector<1x8x128xf32> to vector<8x128xf32>
    %206 = arith.subf %203, %205 : vector<8x128xf32>
    %207 = arith.mulf %206, %206 : vector<8x128xf32>
    %208 = arith.addf %201, %207 : vector<8x128xf32>
    %209 = vector.extract_strided_slice %29 {offsets = [2, 0, 0], sizes = [1, 8, 128], strides = [1, 1, 1]} : vector<5x8x128xf32> to vector<1x8x128xf32>
    %210 = vector.shape_cast %209 : vector<1x8x128xf32> to vector<8x128xf32>
    %211 = math.sqrt %210 : vector<8x128xf32>
    %212 = vector.extract_strided_slice %31 {offsets = [2, 0, 0], sizes = [1, 8, 128], strides = [1, 1, 1]} : vector<5x8x128xf32> to vector<1x8x128xf32>
    %213 = vector.shape_cast %212 : vector<1x8x128xf32> to vector<8x128xf32>
    %214 = math.sqrt %213 : vector<8x128xf32>
    %215 = arith.subf %211, %214 : vector<8x128xf32>
    %216 = arith.mulf %215, %215 : vector<8x128xf32>
    %217 = vector.extract_strided_slice %29 {offsets = [3, 0, 0], sizes = [1, 8, 128], strides = [1, 1, 1]} : vector<5x8x128xf32> to vector<1x8x128xf32>
    %218 = vector.shape_cast %217 : vector<1x8x128xf32> to vector<8x128xf32>
    %219 = math.sqrt %218 : vector<8x128xf32>
    %220 = vector.extract_strided_slice %31 {offsets = [3, 0, 0], sizes = [1, 8, 128], strides = [1, 1, 1]} : vector<5x8x128xf32> to vector<1x8x128xf32>
    %221 = vector.shape_cast %220 : vector<1x8x128xf32> to vector<8x128xf32>
    %222 = math.sqrt %221 : vector<8x128xf32>
    %223 = arith.subf %219, %222 : vector<8x128xf32>
    %224 = arith.mulf %223, %223 : vector<8x128xf32>
    %225 = arith.addf %216, %224 : vector<8x128xf32>
    %226 = arith.addf %208, %225 : vector<8x128xf32>
    %227 = arith.select %153, %195, %226 : vector<8x128xi1>, vector<8x128xf32>
    %cst_28 = arith.constant 5.000000e+00 : f32
    %228 = vector.broadcast %cst_28 : f32 to vector<8x128xf32>
    %229 = arith.mulf %228, %227 : vector<8x128xf32>
    %230 = arith.subf %159, %154 : vector<8x128xf32>
    %231 = arith.mulf %230, %230 : vector<8x128xf32>
    %232 = arith.addf %229, %231 : vector<8x128xf32>
    %233 = arith.mulf %164, %164 : vector<8x128xf32>
    %234 = arith.addf %232, %233 : vector<8x128xf32>
    %235 = arith.addf %234, %28 : vector<8x128xf32>
    %236 = arith.select %5, %235, %10 : vector<8x128xi1>, vector<8x128xf32>
    %cst_29 = arith.constant 5.000000e-01 : f32
    %237 = vector.broadcast %cst_29 : f32 to vector<8x128xf32>
    %238 = arith.mulf %237, %23 : vector<8x128xf32>
    %239 = arith.select %9, %238, %10 : vector<8x128xi1>, vector<8x128xf32>
    %240 = arith.addf %236, %239 : vector<8x128xf32>
    %cst_30 = arith.constant dense<0.000000e+00> : vector<128xf32>
    %241 = vector.multi_reduction <add>, %240, %cst_30 [0] : vector<8x128xf32> to vector<128xf32>
    %242 = vector.shape_cast %241 : vector<128xf32> to vector<1x128xf32>
    %243 = vector.shape_cast %242 : vector<1x128xf32> to vector<1x1x128xf32>
    %c0_31 = arith.constant 0 : index
    %c0_32 = arith.constant 0 : index
    %c0_33 = arith.constant 0 : index
    %244 = vector.load %arg3[%c0_31, %c0_32, %c0_33] : memref<1x1x128xf32, #tpu.memory_space<vmem>>, vector<1x1x128xf32>
    tpu.vector_store %arg3[%c0_31, %c0_32, %c0_33], %243 {strides = array<i32>} : memref<1x1x128xf32, #tpu.memory_space<vmem>>, vector<1x1x128xf32>,
    return
  }
  func.func @transform_0(%arg0: i32) -> (i32, i32, i32) {
    %c0_i32 = arith.constant 0 : i32
    %c0_i32_0 = arith.constant 0 : i32
    %c0_i32_1 = arith.constant 0 : i32
    return %c0_i32, %arg0, %c0_i32_0 : i32, i32, i32
  }
  func.func @transform_1(%arg0: i32) -> (i32, i32, i32) {
    %c0_i32 = arith.constant 0 : i32
    %c0_i32_0 = arith.constant 0 : i32
    %c0_i32_1 = arith.constant 0 : i32
    return %c0_i32, %arg0, %c0_i32_0 : i32, i32, i32
  }
  func.func @transform_2(%arg0: i32) -> (i32, i32, i32) {
    %c0_i32 = arith.constant 0 : i32
    %c0_i32_0 = arith.constant 0 : i32
    %c0_i32_1 = arith.constant 0 : i32
    return %arg0, %c0_i32, %c0_i32_0 : i32, i32, i32
  }
}

</mosaic_0001>

<bundles_post_ra>
// kernel: tpu_custom_call.1
= control target key start
LH: loop header
LB: loop body
LE: loop exit
PB: predicated region body
PF: predicated region fallthrough
CT: control target
= control target key end

     0   :  { %7 = vsyncpa [#allocation3], 0  ;;  %s671_s0 = inlined_call_operand.hbm [shape: f32[26,8,128], index: 0, kind: input, shape index: {}]   ;;  %s672_s1 = inlined_call_operand.hbm [shape: f32[26,8,128], index: 1, kind: input, shape index: {}]   ;;  %s673_s2 = inlined_call_operand.hbm [shape: f32[1,1,128], index: 2, kind: output, shape index: {}]  }
   0x1   :  { %8 = vsyncpa [#allocation6], 0 }
   0x2   :  { %9 = vsyncpa [#allocation4], 0  ;;  %s430_s9 = smov [#allocation2]   ;;  %s358_s13 = scalar_lea.hbm %s671_s0, 3328 }
   0x3   :  { %s15_s10 = sshll.u32 %s430_s9, 4  ;;  %p359_p0 = scmp.ne.s32.totalorder %s671_s0, %s358_s13  ;;  %s16_s10 = int_to_ptr.vmem [resolvable:$true] %s15_s10 }
   0x4   :  { %p362_p1 = scmp.lt.u32.totalorder %s358_s13, %s671_s0 }
   0x6   :  { %p364_p2 = pnand %p362_p1, %p359_p0 }
   0x8   :  { %367 = shalt.err (!%p364_p2)
}
   0x9   :  { %s368_s18 = scalar_lea.vmem %s16_s10, 3328  ;;  %p373_p4 = scmp.lt.s32.totalorder %s16_s10, %s16_s10 }
   0xa   :  { %p369_p3 = scmp.ne.s32.totalorder %s16_s10, %s368_s18  ;;  %p374_p5 = scmp.lt.s32.totalorder %s368_s18, %s368_s18 }
   0xc   :  { %p375_p6 = por %p374_p5, %p373_p4 }
   0xe   :  { %p376_p7 = pnand %p375_p6, %p369_p3 }
  0x10   :  { %379 = shalt.err (!%p376_p7)
}
  0x11   :  { %s431_s19 = smov 128   ;;  %s432_s20 = smov 8  }
  0x12   :  { %21 = dma.hbm_to_vmem [thread:$0]  %s671_s0, 3328, %s16_s10, [#allocation3], %s431_s19, %s431_s19, %s432_s20  }
  0x13   :  { %s433_s23 = smov [#allocation5]   ;;  %s380_s27 = scalar_lea.hbm %s672_s1, 3328 }
  0x14   :  { %s27_s24 = sshll.u32 %s433_s23, 4  ;;  %p381_p8 = scmp.ne.s32.totalorder %s672_s1, %s380_s27  ;;  %s28_s24 = int_to_ptr.vmem [resolvable:$true] %s27_s24 }
  0x15   :  { %p384_p9 = scmp.lt.u32.totalorder %s380_s27, %s672_s1 }
  0x17   :  { %p386_p10 = pnand %p384_p9, %p381_p8 }
  0x19   :  { %389 = shalt.err (!%p386_p10)
}
  0x1a   :  { %s390_s4 = scalar_lea.vmem %s28_s24, 3328  ;;  %p395_p12 = scmp.lt.s32.totalorder %s28_s24, %s28_s24 }
  0x1b   :  { %p391_p11 = scmp.ne.s32.totalorder %s28_s24, %s390_s4  ;;  %p396_p13 = scmp.lt.s32.totalorder %s390_s4, %s390_s4 }
  0x1d   :  { %p397_p0 = por %p396_p13, %p395_p12 }
  0x1f   :  { %p398_p1 = pnand %p397_p0, %p391_p11 }
  0x21   :  { %401 = shalt.err (!%p398_p1)
}
  0x22   :  { %33 = dma.hbm_to_vmem [thread:$0]  %s672_s1, 3328, %s28_s24, [#allocation6], %s431_s19, %s431_s19, %s432_s20  }
  0x23   :  { %424 = dma.done.wait [#allocation3], 3328  }
  0x24   :  { %425 = vsyncadd [#allocation3], 4294963968 }
  0x25   :  { %426 = dma.done.wait [#allocation6], 3328  }
  0x26   :  { %427 = vsyncadd [#allocation6], 4294963968  ;;  %v474_v0 = vld [vmem:[#allocation2] sm:$0xff]  ;;  %v476_v1 = vld [vmem:[#allocation2 + $0x8] sm:$0xff]  ;;  %s434_s1 = smov [#allocation7]  }
  0x27   :  { %v478_v2 = vld [vmem:[#allocation2 + $0x10] sm:$0xff]  ;;  %v480_v3 = vld [vmem:[#allocation2 + $0x18] sm:$0xff]  ;;  %v482_v4 = vld [vmem:[#allocation2 + $0x28] sm:$0xff]  ;;  %v150_v9 = vmul.f32 0.25, %v474_v0  ;;  %v151_v11 = vmul.f32 0.25, %v476_v1  ;;  %s323_s6 = sshll.u32 %s434_s1, 4  ;;  %s324_s6 = int_to_ptr.vmem [resolvable:$true] %s323_s6 }
  0x28   :  { %v484_v5 = vld [vmem:[#allocation2 + $0x38] sm:$0xff]  ;;  %v486_v6 = vld [vmem:[#allocation2 + $0x30] sm:$0xff]  ;;  %v488_v7 = vld [vmem:[#allocation2 + $0x40] sm:$0xff]  ;;  %v146_v8 = vmul.f32 0.5, %v478_v2  ;;  %v147_v10 = vmul.f32 0.5, %v480_v3  ;;  %v185_v13 = vmul.f32 0.25, %v482_v4  ;;  %p407_p3 = scmp.lt.s32.totalorder %s324_s6, %s324_s6 }
  0x29   :  { %v181_v12 = vmul.f32 0.5, %v484_v5  ;;  %v50_v14 = vld [vmem:[#allocation2 + $0x50] sm:$0xff]  ;;  %v182_v15 = vmul.f32 0.5, %v488_v7  ;;  %v186_v16 = vmul.f32 0.25, %v486_v6  ;;  %v51_v17 = vld [vmem:[#allocation2 + $0x58] sm:$0xff]  ;;  %v52_v18 = vld [vmem:[#allocation2 + $0x60] sm:$0xff]  ;;  %338 = vrsqrt.f32 %v484_v5 }
  0x2a   :  { %v498_v19 = vld [vmem:[#allocation5] sm:$0xff]  ;;  %v53_v20 = vld [vmem:[#allocation2 + $0x68] sm:$0xff]  ;;  %v500_v21 = vld [vmem:[#allocation5 + $0x8] sm:$0xff]  ;;  %v506_v24 = vsub.f32 %v150_v9, %v146_v8  ;;  %v508_v25 = vadd.f32 %v150_v9, %v146_v8  ;;  %v510_v29 = vsub.f32 %v151_v11, %v147_v10  ;;  %v512_v30 = vadd.f32 %v151_v11, %v147_v10  ;;  %s402_s7 = scalar_lea.vmem %s324_s6, 16  ;;  %s406_s8 = scalar_lea.vmem %s324_s6, 32 }
  0x2b   :  { %v502_v22 = vld [vmem:[#allocation5 + $0x10] sm:$0xff]  ;;  %v504_v23 = vld [vmem:[#allocation5 + $0x18] sm:$0xff]  ;;  %v78_v28 = vld [vmem:[#allocation5 + $0x60] sm:$0xff]  ;;  %v514_v31 = vsub.f32 %v185_v13, %v181_v12  ;;  %v516_v32 = vadd.f32 %v185_v13, %v181_v12  ;;  %v518_v38 = vsub.f32 %v186_v16, %v182_v15  ;;  %v520_v39 = vadd.f32 %v186_v16, %v182_v15  ;;  %p403_p2 = scmp.ne.s32.totalorder %s324_s6, %s402_s7  ;;  %p408_p4 = scmp.lt.s32.totalorder %s406_s8, %s402_s7 }
  0x2c   :  { %v76_v26 = vld [vmem:[#allocation5 + $0x50] sm:$0xff]  ;;  %v77_v27 = vld [vmem:[#allocation5 + $0x58] sm:$0xff]  ;;  %v54_v33 = vld [vmem:[#allocation2 + $0x70] sm:$0xff]  ;;  %v148_v42 = vmul.f32 0.5, %v502_v22  ;;  %v149_v43 = vmul.f32 0.5, %v504_v23  ;;  %v152_v44 = vmul.f32 0.25, %v498_v19  ;;  %v101_v46 = vsub.f32 %v52_v18, %v78_v28 }
  0x2d   :  { %v55_v34 = vld [vmem:[#allocation2 + $0x78] sm:$0xff]  ;;  %v99_v36 = vsub.f32 %v50_v14, %v76_v26  ;;  %v100_v37 = vsub.f32 %v51_v17, %v77_v27  ;;  %v80_v40 = vld [vmem:[#allocation5 + $0x70] sm:$0xff]  ;;  %v81_v41 = vld [vmem:[#allocation5 + $0x78] sm:$0xff]  ;;  %v153_v45 = vmul.f32 0.25, %v500_v21  ;;  %v171_v47 = vsub.f32 %v508_v25, %v506_v24  ;;  %p409_p5 = por %p408_p4, %p407_p3 }
  0x2e   :  { %v79_v35 = vld [vmem:[#allocation5 + $0x68] sm:$0xff]  ;;  %v172_v48 = vsub.f32 %v512_v30, %v510_v29  ;;  %v56_v49 = vld [vmem:[#allocation2 + $0x80] sm:$0xff]  ;;  %v57_v50 = vld [vmem:[#allocation2 + $0x88] sm:$0xff]  ;;  %v206_v52 = vsub.f32 %v516_v32, %v514_v31  ;;  %v207_v53 = vsub.f32 %v520_v39, %v518_v38  ;;  %v103_v57 = vsub.f32 %v54_v33, %v80_v40 }
  0x2f   :  { %v102_v51 = vsub.f32 %v53_v20, %v79_v35  ;;  %v534_v54 = vld [vmem:[#allocation5 + $0x28] sm:$0xff]  ;;  %v82_v55 = vld [vmem:[#allocation5 + $0x80] sm:$0xff]  ;;  %v104_v58 = vsub.f32 %v55_v34, %v81_v41  ;;  %v115_v59 = vmul.f32 %v99_v36, %v99_v36  ;;  %v116_v60 = vmul.f32 %v100_v37, %v100_v37  ;;  %v538_v10 = vld [vmem:[#allocation5 + $0x38] sm:$0xff]  ;;  %p410_p6 = pnand %p409_p5, %p403_p2 }
  0x30   :  { %v83_v56 = vld [vmem:[#allocation5 + $0x88] sm:$0xff]  ;;  %v158_v61 = vsub.f32 %v152_v44, %v148_v42  ;;  %v159_v62 = vadd.f32 %v152_v44, %v148_v42  ;;  %v160_v63 = vsub.f32 %v153_v45, %v149_v43  ;;  %v117_v8 = vmul.f32 %v101_v46, %v101_v46  ;;  %v540_v11 = vld [vmem:[#allocation5 + $0x40] sm:$0xff]  ;;  %v543_v16 = vld [vmem:[#allocation5 + $0x30] sm:$0xff] }
  0x31   :  { %v173_v9 = vmul.f32 %v172_v48, %v171_v47  ;;  %340 = vrsqrt.f32 %v488_v7  ;;  %v105_v12 = vsub.f32 %v56_v49, %v82_v55  ;;  %v106_v13 = vsub.f32 %v57_v50, %v83_v56 }
  0x32   :  { %v187_v14 = vmul.f32 0.25, %v534_v54  ;;  %v208_v15 = vmul.f32 %v207_v53, %v206_v52  ;;  %v118_v17 = vmul.f32 %v102_v51, %v102_v51  ;;  %v119_v18 = vmul.f32 %v103_v57, %v103_v57 }
  0x33   :  { %v120_v20 = vmul.f32 %v104_v58, %v104_v58  ;;  %v131_v26 = vadd.f32 %v116_v60, %v115_v59  ;;  %v161_v27 = vadd.f32 %v153_v45, %v149_v43  ;;  %v162_v28 = vmin.f32 %v508_v25, %v159_v62  ;;  %v339_v55 = vpop.eup %338  ;;  %v58_v60 = vld [vmem:[#allocation2 + $0x90] sm:$0xff] }
  0x34   :  { %v163_v33 = vmax.f32 %v506_v24, %v158_v61  ;;  %v167_v34 = vmax.f32 %v510_v29, %v160_v63  ;;  %v174_v36 = vsub.f32 %v159_v62, %v158_v61  ;;  %v183_v37 = vmul.f32 0.5, %v538_v10  ;;  %v84_v61 = vld [vmem:[#allocation5 + $0x90] sm:$0xff] }
  0x35   :  { %v132_v35 = vadd.f32 %v131_v26, %v117_v8  ;;  %v184_v40 = vmul.f32 0.5, %v540_v11  ;;  %v166_v42 = vmin.f32 %v512_v30, %v161_v27  ;;  %v175_v44 = vsub.f32 %v161_v27, %v160_v63  ;;  %v85_v27 = vld [vmem:[#allocation5 + $0x98] sm:$0xff] }
  0x36   :  { %v164_v41 = vsub.f32 %v162_v28, %v163_v33  ;;  %v188_v46 = vmul.f32 0.25, %v543_v16  ;;  %v121_v47 = vmul.f32 %v105_v12, %v105_v12  ;;  %v193_v45 = vsub.f32 %v187_v14, %v183_v37 }
  0x37   :  { %v133_v43 = vadd.f32 %v132_v35, %v118_v17  ;;  %v194_v25 = vadd.f32 %v187_v14, %v183_v37  ;;  %v168_v24 = vsub.f32 %v166_v42, %v167_v34  ;;  %v176_v49 = vmul.f32 %v175_v44, %v174_v36  ;;  %v86_v34 = vld [vmem:[#allocation5 + $0xa0] sm:$0xff] }
  0x38   :  { %v165_v48 = vmax.f32 %v164_v41, 0.0  ;;  %v195_v29 = vsub.f32 %v188_v46, %v184_v40  ;;  %v196_v51 = vadd.f32 %v188_v46, %v184_v40  ;;  %v198_v53 = vmax.f32 %v514_v31, %v193_v45  ;;  %v87_v41 = vld [vmem:[#allocation5 + $0xa8] sm:$0xff]  ;;  %v62_v44 = vld [vmem:[#allocation2 + $0xb0] sm:$0xff] }
  0x39   :  { %v134_v50 = vadd.f32 %v133_v43, %v119_v18  ;;  %v197_v52 = vmin.f32 %v516_v32, %v194_v25  ;;  %v169_v56 = vmax.f32 %v168_v24, 0.0  ;;  %v177_v30 = vadd.f32 %v176_v49, %v173_v9  ;;  %v572_v46 = vld [vmem:[#allocation5 + $0x20] sm:$0xff]  ;;  %v89_v24 = vld [vmem:[#allocation5 + $0xb8] sm:$0xff] }
  0x3a   :  { %v202_v57 = vmax.f32 %v518_v38, %v195_v29  ;;  %v209_v58 = vsub.f32 %v194_v25, %v193_v45  ;;  %v201_v8 = vmin.f32 %v520_v39, %v196_v51  ;;  %v210_v12 = vsub.f32 %v196_v51, %v195_v29  ;;  %v59_v38 = vld [vmem:[#allocation2 + $0x98] sm:$0xff]  ;;  %v60_v39 = vld [vmem:[#allocation2 + $0xa0] sm:$0xff] }
  0x3b   :  { %v341_v59 = vpop.eup %340  ;;  %v135_v62 = vadd.f32 %v134_v50, %v120_v20  ;;  %v199_v63 = vsub.f32 %v197_v52, %v198_v53  ;;  %v556_v14 = vmul.f32 %v169_v56, %v165_v48  ;;  %342 = vrsqrt.f32 %v478_v2  ;;  %v63_v48 = vld [vmem:[#allocation2 + $0xb8] sm:$0xff]  ;;  %v583_v51 = vld [vmem:[#allocation2 + $0x20] sm:$0xff] }
  0x3c   :  { %v203_v31 = vsub.f32 %v201_v8, %v202_v57  ;;  %v211_v17 = vmul.f32 %v210_v12, %v209_v58  ;;  %v107_v18 = vsub.f32 %v58_v60, %v84_v61  ;;  %v122_v9 = vmul.f32 %v106_v13, %v106_v13 }
  0x3d   :  { %v200_v32 = vmax.f32 %v199_v63, 0.0  ;;  %v136_v26 = vadd.f32 %v135_v62, %v121_v47  ;;  %344 = vrsqrt.f32 %v538_v10  ;;  %v178_v20 = vsub.f32 %v177_v30, %v556_v14  ;;  %v88_v47 = vld [vmem:[#allocation5 + $0xb0] sm:$0xff] }
  0x3e   :  { %v204_v28 = vmax.f32 %v203_v31, 0.0  ;;  %v212_v33 = vadd.f32 %v211_v17, %v208_v15  ;;  %346 = vrsqrt.f32 %v480_v3  ;;  %vm227_vm0 = vcmp.eq.f32.partialorder %v484_v5, inf  ;;  %v61_v15 = vld [vmem:[#allocation2 + $0xa8] sm:$0xff] }
  0x3f   :  { %vm229_vm1 = vcmp.eq.f32.partialorder %v484_v5, 0.0  ;;  %v230_v13 = vand.u32 2147483648, %v484_v5  ;;  %v108_v36 = vsub.f32 %v59_v38, %v85_v27  ;;  %v123_v37 = vmul.f32 %v107_v18, %v107_v18 }
  0x40   :  { %v562_v35 = vmul.f32 %v204_v28, %v200_v32  ;;  %v137_v40 = vadd.f32 %v136_v26, %v122_v9  ;;  %348 = vrsqrt.f32 %v540_v11  ;;  %vm266_vm2 = vcmp.eq.f32.partialorder %v478_v2, inf }
  0x41   :  { %350 = vrcp.f32 %v178_v20  ;;  %vm243_vm3 = vcmp.eq.f32.partialorder %v488_v7, inf  ;;  %vm245_vm4 = vcmp.eq.f32.partialorder %v488_v7, 0.0  ;;  %v109_v43 = vsub.f32 %v60_v39, %v86_v34 }
  0x42   :  { %v213_v42 = vsub.f32 %v212_v33, %v562_v35  ;;  %v246_v45 = vand.u32 2147483648, %v488_v7  ;;  %v577_v25 = vsub.f32 %v474_v0, %v498_v19  ;;  %352 = vrsqrt.f32 %v502_v22 }
  0x43   :  { %v226_v49 = vmul.f32 %v339_v55, %v484_v5  ;;  %vm268_vm5 = vcmp.eq.f32.partialorder %v478_v2, 0.0  ;;  %v269_v29 = vand.u32 2147483648, %v478_v2  ;;  %v110_v52 = vsub.f32 %v61_v15, %v87_v41 }
  0x44   :  { %354 = vrcp.f32 %v213_v42  ;;  %v124_v53 = vmul.f32 %v108_v36, %v108_v36  ;;  %v138_v56 = vadd.f32 %v137_v40, %v123_v37  ;;  %v242_v0 = vmul.f32 %v341_v59, %v488_v7 }
  0x45   :  { %v343_v50 = vpop.eup %342  ;;  %v588_v19 = vsub.f32 %v583_v51, %v572_v46  ;;  %v111_v30 = vsub.f32 %v62_v44, %v88_v47  ;;  %v220_v55 = vsub.f32 %v482_v4, %v534_v54  ;;  %v222_v57 = vsub.f32 %v486_v6, %v543_v16 }
  0x46   :  { %v594_v60 = vsub.f32 %v63_v48, %v89_v24  ;;  %v125_v61 = vmul.f32 %v109_v43, %v109_v43  ;;  %vm234_vm6 = vcmp.eq.f32.partialorder %v538_v10, inf  ;;  %356 = vrsqrt.f32 %v504_v23  ;;  %v64_v48 = vld [vmem:[#allocation2 + $0xc0] sm:$0xff]  ;;  %v75_v24 = vld [vmem:[#allocation5 + $0x48] sm:$0xff] }
  0x47   :  { %v345_v58 = vpop.eup %344  ;;  %v228_v59 = vsel %vm227_vm0, %v484_v5, %v226_v49  ;;  %v237_v63 = vand.u32 2147483648, %v538_v10  ;;  %v265_v4 = vmul.f32 %v343_v50, %v478_v2  ;;  %v126_v6 = vmul.f32 %v110_v52, %v110_v52  ;;  %v90_v49 = vld [vmem:[#allocation5 + $0xc0] sm:$0xff] }
  0x48   :  { %v233_v62 = vmul.f32 %v345_v58, %v538_v10  ;;  %v347_v54 = vpop.eup %346  ;;  %v139_v16 = vadd.f32 %v138_v56, %v124_v53  ;;  %vm236_vm7 = vcmp.eq.f32.partialorder %v538_v10, 0.0  ;;  %v244_v8 = vsel %vm243_vm3, %v488_v7, %v242_v0 }
  0x49   :  { %v127_v12 = vmul.f32 %v111_v30, %v111_v30  ;;  %v221_v32 = vmul.f32 %v220_v55, %v220_v55  ;;  %v223_v31 = vmul.f32 %v222_v57, %v222_v57  ;;  %v231_v9 = vsel %vm229_vm1, %v230_v13, %v228_v59 }
  0x4a   :  { %v235_v17 = vsel %vm234_vm6, %v538_v10, %v233_v62  ;;  %v349_v18 = vpop.eup %348  ;;  %vm250_vm8 = vcmp.eq.f32.partialorder %v540_v11, inf  ;;  %vm252_vm9 = vcmp.eq.f32.partialorder %v540_v11, 0.0  ;;  %v253_v26 = vand.u32 2147483648, %v540_v11 }
  0x4b   :  { %v351_v38 = vpop.eup %350  ;;  %v238_v27 = vsel %vm236_vm7, %v237_v63, %v235_v17  ;;  %v247_v20 = vsel %vm245_vm4, %v246_v45, %v244_v8  ;;  %v249_v28 = vmul.f32 %v349_v18, %v540_v11  ;;  %v267_v10 = vsel %vm266_vm2, %v478_v2, %v265_v4  ;;  %v65_v63 = vld [vmem:[#allocation2 + $0xc8] sm:$0xff]  ;;  %v91_v4 = vld [vmem:[#allocation5 + $0xc8] sm:$0xff] }
  0x4c   :  { %v353_v33 = vpop.eup %352  ;;  %v140_v5 = vadd.f32 %v139_v16, %v125_v61  ;;  %vm273_vm10 = vcmp.eq.f32.partialorder %v502_v22, inf  ;;  %v276_v39 = vand.u32 2147483648, %v502_v22  ;;  %v281_v34 = vmul.f32 %v347_v54, %v480_v3 }
  0x4d   :  { %v251_v36 = vsel %vm250_vm8, %v540_v11, %v249_v28  ;;  %v272_v7 = vmul.f32 %v353_v33, %v502_v22  ;;  %vm275_vm11 = vcmp.eq.f32.partialorder %v502_v22, 0.0  ;;  %vm282_vm12 = vcmp.eq.f32.partialorder %v480_v3, inf }
  0x4e   :  { %v355_v13 = vpop.eup %354  ;;  %v239_v37 = vsub.f32 %v231_v9, %v238_v27  ;;  %v254_v40 = vsel %vm252_vm9, %v253_v26, %v251_v36  ;;  %v270_v15 = vsel %vm268_vm5, %v269_v29, %v267_v10  ;;  %v285_v41 = vand.u32 2147483648, %v480_v3 }
  0x4f   :  { %v180_v42 = vmul.f32 %v351_v38, %v556_v14  ;;  %v215_v44 = vmul.f32 %v355_v13, %v562_v35  ;;  %v255_v47 = vsub.f32 %v247_v20, %v254_v40  ;;  %v274_v43 = vsel %vm273_vm10, %v502_v22, %v272_v7  ;;  %v49_v22 = vld [vmem:[#allocation2 + $0x48] sm:$0xff] }
  0x50   :  { %v357_v45 = vpop.eup %356  ;;  %v261_v11 = vsub.f32 %v476_v1, %v500_v21  ;;  %v277_v50 = vsel %vm275_vm11, %v276_v39, %v274_v43  ;;  %v283_v2 = vsel %vm282_vm12, %v480_v3, %v281_v34  ;;  %vm284_vm13 = vcmp.eq.f32.partialorder %v480_v3, 0.0 }
  0x51   :  { %v141_v29 = vadd.f32 %v140_v5, %v126_v6  ;;  %vm289_vm14 = vcmp.eq.f32.partialorder %v504_v23, inf  ;;  %vm291_vm15 = vcmp.eq.f32.partialorder %v504_v23, 0.0  ;;  %v292_v14 = vand.u32 2147483648, %v504_v23 }
  0x52   :  { %v240_v35 = vmul.f32 %v239_v37, %v239_v37  ;;  %v256_v52 = vmul.f32 %v255_v47, %v255_v47  ;;  %v278_v53 = vsub.f32 %v270_v15, %v277_v50  ;;  %v288_v56 = vmul.f32 %v357_v45, %v504_v23 }
  0x53   :  { %v96_v0 = vsub.f32 %v49_v22, %v75_v24  ;;  %v113_v1 = vsub.f32 %v64_v48, %v90_v49  ;;  %vm216_vm0 = vcmp.gt.f32.partialorder %v215_v44, %v180_v42  ;;  %v286_v21 = vsel %vm284_vm13, %v285_v41, %v283_v2 }
  0x54   :  { %v128_v3 = vmul.f32 %v594_v60, %v594_v60  ;;  %v260_v30 = vmul.f32 %v577_v25, %v577_v25  ;;  %v262_v55 = vmul.f32 %v261_v11, %v261_v11  ;;  %v290_v57 = vsel %vm289_vm14, %v504_v23, %v288_v56 }
  0x55   :  { %v142_v58 = vadd.f32 %v141_v29, %v127_v12  ;;  %v217_v61 = vmax.f32 %v180_v42, %v215_v44  ;;  %v224_v59 = vadd.f32 %v223_v31, %v221_v32  ;;  %v293_v62 = vsel %vm291_vm15, %v292_v14, %v290_v57 }
  0x56   :  { %v218_v54 = vsel %vm216_vm0, %v49_v22, %v583_v51  ;;  %v257_v6 = vadd.f32 %v256_v52, %v240_v35  ;;  %v279_v16 = vmul.f32 %v278_v53, %v278_v53  ;;  %v294_v60 = vsub.f32 %v286_v21, %v293_v62 }
  0x57   :  { %v95_v25 = vmul.f32 %v588_v19, %v588_v19  ;;  %v97_v8 = vmul.f32 %v96_v0, %v96_v0  ;;  %v263_v17 = vadd.f32 %v262_v55, %v260_v30  ;;  %v114_v12 = vsub.f32 %v65_v63, %v91_v4 }
  0x58   :  { %v295_v18 = vmul.f32 %v294_v60, %v294_v60  ;;  %v129_v9 = vmul.f32 %v113_v1, %v113_v1  ;;  %v143_v32 = vadd.f32 %v142_v58, %v128_v3  ;;  %v300_v31 = vsub.f32 %v218_v54, %v217_v61 }
  0x59   :  { %v258_v23 = vadd.f32 %v257_v6, %v224_v59  ;;  %v219_v38 = vsel %vm216_vm0, %v583_v51, %v49_v22  ;;  %v98_v20 = vadd.f32 %v97_v8, %v95_v25  ;;  %v130_v28 = vmul.f32 %v114_v12, %v114_v12 }
  0x5a   :  { %v296_v26 = vadd.f32 %v295_v18, %v279_v16  ;;  %v144_v10 = vadd.f32 %v143_v32, %v129_v9  ;;  %v301_v33 = vmul.f32 %v300_v31, %v300_v31  ;;  %v303_v39 = vmul.f32 %v219_v38, %v219_v38 }
  0x5b   :  { %v307_v36 = vmul.f32 0.5, %v98_v20  ;;  %vm93_vm1 = vcmp.eq.f32.partialorder %v572_v46, 0.0  ;;  %vm92_vm2 = vcmp.gt.f32.partialorder %v572_v46, 0.0 }
  0x5c   :  { %v297_v27 = vadd.f32 %v296_v26, %v263_v17  ;;  %v145_v34 = vadd.f32 %v144_v10, %v130_v28 }
  0x5d   :  { %v308_v40 = vsel %vm93_vm1, %v307_v36, 0.0 }
  0x5e   :  { %v298_v5 = vsel %vm216_vm0, %v258_v23, %v297_v27 }
  0x5f   :  { %v299_v19 = vmul.f32 5.0, %v298_v5 }
  0x61   :  { %v302_v13 = vadd.f32 %v301_v33, %v299_v19 }
  0x63   :  { %v304_v7 = vadd.f32 %v303_v39, %v302_v13 }
  0x65   :  { %v305_v37 = vadd.f32 %v304_v7, %v145_v34 }
  0x67   :  { %v306_v51 = vsel %vm92_vm2, %v305_v37, 0.0 }
  0x68   :  { %v309_v15 = vadd.f32 %v308_v40, %v306_v51 }
  0x6a   :  { %v310_v41 = vrot.slane %v309_v15, 4 }
  0x6c   :  { %v311_v47 = vadd.f32 %v310_v41, %v309_v15 }
  0x6e   :  { %v312_v43 = vrot.slane %v311_v47, 2 }
  0x70   :  { %v313_v45 = vadd.f32 %v312_v43, %v311_v47 }
  0x72   :  { %v314_v42 = vrot.slane %v313_v45, 1 }
  0x74   :  { %v315_v44 = vadd.f32 %v314_v42, %v313_v45 }
  0x76   :  { %316 = vst [vmem:[#allocation7] sm:$0x1] %v315_v44 }
  0x77   :  { %413 = shalt.err (!%p410_p6)
}
  0x78   :  { %s414_s11 = scalar_lea.hbm %s673_s2, 16 }
  0x79   :  { %p415_p7 = scmp.ne.s32.totalorder %s673_s2, %s414_s11  ;;  %p418_p8 = scmp.lt.u32.totalorder %s414_s11, %s673_s2 }
  0x7b   :  { %p420_p9 = pnand %p418_p8, %p415_p7 }
  0x7d   :  { %423 = shalt.err (!%p420_p9)
}
  0x7e   :  { %326 = dma.vmem_to_hbm [thread:$0]  %s324_s6, 16, %s673_s2, [#allocation4]  }
  0x7f   :  { %428 = dma.done.wait [#allocation4], 16  }
  0x80   :  { %429 = vsyncadd [#allocation4], 4294967280 }
  0x81   :  { %330 = vsyncpa [#allocation3], 1 }
  0x82   :  { %331 = vsyncpa [#allocation6], 1 }
  0x83   :  { %332 = vsyncpa [#allocation4], 1 }

</bundles_post_ra>
